<compile_context>
chip_gen: v6e
topology: v6e:2x2x1
jax: 0.10.0
libtpu: 0.0.40
codegen_flags: <defaults>
</compile_context>

<pallas_src>
import functools

import jax
import jax.numpy as jnp
from jax import lax
from jax.experimental import pallas as pl
from jax.experimental.pallas import tpu as pltpu

HIDDEN = 80


def _round_up(x, m):
    return ((x + m - 1) // m) * m


def _gelu_exact(x):
    # PyTorch nn.GELU() default: exact erf formulation.
    return 0.5 * x * (1.0 + lax.erf(x * (1.0 / jnp.sqrt(2.0).astype(x.dtype))))


def neural_ode_kernel(
    t_ref,      # SMEM (1, 1) float32: t mod 1
    y_ref,      # VMEM (Bt, Fin)
    wt_ref,     # VMEM (1, H)   : row of W_in multiplying the t column
    wy_ref,     # VMEM (Fin, H) : rows of W_in multiplying y
    bin_ref,    # VMEM (1, H)
    w1_ref,     # VMEM (H, H)
    b1_ref,     # VMEM (1, H)
    w2_ref,     # VMEM (H, H)
    b2_ref,     # VMEM (1, H)
    wo_ref,     # VMEM (H, Fout)
    bo_ref,     # VMEM (1, Fout)
    o_ref,      # VMEM (Bt, Fout)
):
    tfrac = t_ref[0, 0]
    y = y_ref[...]  # already f32

    # l_in + GELU  (algebraic form of the [t, y] concat)
    h = (
        tfrac * wt_ref[...]
        + jnp.dot(y, wy_ref[...], preferred_element_type=jnp.float32)
        + bin_ref[...]
    )
    h = _gelu_exact(h)

    # l1 + GELU
    h = _gelu_exact(
        jnp.dot(h, w1_ref[...], preferred_element_type=jnp.float32) + b1_ref[...]
    )

    # l2 + GELU
    h = _gelu_exact(
        jnp.dot(h, w2_ref[...], preferred_element_type=jnp.float32) + b2_ref[...]
    )

    # l_out
    out = jnp.dot(h, wo_ref[...], preferred_element_type=jnp.float32) + bo_ref[...]
    o_ref[...] = out.astype(o_ref.dtype)


@functools.partial(jax.jit, static_argnames=("btile",))
def neural_ode_forward(t, y, params, *, btile=512):
    """t: scalar float32, y: (B, Fin) float32, params: dict of weights."""
    B, fin = y.shape
    H = params["w1"].shape[0]
    fout = params["w_out"].shape[1]

    # Batch tile: multiple of 8 sublanes; large tiles keep the MXU M-dim deep.
    bt = min(_round_up(btile, 8), _round_up(B, 8))
    Bp = _round_up(B, bt)
    grid = (Bp // bt,)

    if Bp != B:
        y = jnp.pad(y, ((0, Bp - B), (0, 0)))

    tfrac = jnp.mod(t, 1.0).astype(jnp.float32).reshape(1, 1)

    def resident(shape):
        # Whole weight, same block for every grid step -> fetched once,
        # stays resident in VMEM across all batch tiles.
        return pl.BlockSpec(shape, lambda i: (0, 0))

    out = pl.pallas_call(
        neural_ode_kernel,
        out_shape=jax.ShapeDtypeStruct((Bp, fout), jnp.float32),
        grid=grid,
        in_specs=[
            pl.BlockSpec(memory_space=pltpu.MemorySpace.SMEM),  # t (scalar)
            pl.BlockSpec((bt, fin), lambda i: (i, 0)),          # y (streamed)
            resident((1, H)),      # w_in_t
            resident((fin, H)),    # w_in_y
            resident((1, H)),      # b_in
            resident((H, H)),      # w1
            resident((1, H)),      # b1
            resident((H, H)),      # w2
            resident((1, H)),      # b2
            resident((H, fout)),   # w_out
            resident((1, fout)),   # b_out
        ],
        out_specs=pl.BlockSpec((bt, fout), lambda i: (i, 0)),
        compiler_params=pltpu.CompilerParams(
            dimension_semantics=("parallel",),
        ),
    )(
        tfrac,
        y,
        params["w_in_t"],
        params["w_in_y"],
        params["b_in"],
        params["w1"],
        params["b1"],
        params["w2"],
        params["b2"],
        params["w_out"],
        params["b_out"],
    )

    return out[:B] if Bp != B else out


def init_params(key, num_in_features, num_out_features):
    """Deterministic synthetic init mirroring the nn.Linear shapes.

    Weights stored (in_features, out_features); l_in's first input row
    corresponds to the concatenated t column.
    """
    ks = jax.random.split(key, 8)

    def lin(kw, kb, fan_in, fan_out):
        bound = 1.0 / jnp.sqrt(jnp.float32(fan_in))
        w = jax.random.uniform(kw, (fan_in, fan_out), jnp.float32, -bound, bound)
        b = jax.random.uniform(kb, (1, fan_out), jnp.float32, -bound, bound)
        return w, b

    w_in, b_in = lin(ks[0], ks[1], num_in_features + 1, HIDDEN)
    w1, b1 = lin(ks[2], ks[3], HIDDEN, HIDDEN)
    w2, b2 = lin(ks[4], ks[5], HIDDEN, HIDDEN)
    w_out, b_out = lin(ks[6], ks[7], HIDDEN, num_out_features)

    return {
        "w_in_t": w_in[:1, :],   # (1, H)
        "w_in_y": w_in[1:, :],   # (Fin, H)
        "b_in": b_in,
        "w1": w1,
        "b1": b1,
        "w2": w2,
        "b2": b2,
        "w_out": w_out,
        "b_out": b_out,
    }


def neural_ode_reference(t, y, params):
    """Pure-JAX reference matching the PyTorch forward."""
    shape = list(y.shape)
    shape[-1] = 1
    tt = jnp.ones(tuple(shape), y.dtype) * jnp.mod(t, 1.0)
    x = jnp.concatenate((tt, y), axis=-1)
    w_in = jnp.concatenate((params["w_in_t"], params["w_in_y"]), axis=0)
    x = jax.nn.gelu(x @ w_in + params["b_in"], approximate=False)
    x = jax.nn.gelu(x @ params["w1"] + params["b1"], approximate=False)
    x = jax.nn.gelu(x @ params["w2"] + params["b2"], approximate=False)
    return x @ params["w_out"] + params["b_out"]


if __name__ == "__main__":
    num_in_features = 16
    num_out_features = 16

    key = jax.random.PRNGKey(0)
    k_params, k_y1, k_y2 = jax.random.split(key, 3)
    params = init_params(k_params, num_in_features, num_out_features)

    # Case 1: tiny batch, single tile.
    y1 = jax.random.normal(k_y1, (8, num_in_features), jnp.float32)
    t1 = jnp.float32(3.7)  # fractional part 0.7 feeds the network
    out1 = jax.block_until_ready(neural_ode_forward(t1, y1, params))
    ref1 = neural_ode_reference(t1, y1, params)
    assert out1.shape == (8, num_out_features)
    assert jnp.allclose(out1, ref1, atol=1e-5, rtol=1e-5), (
        f"max abs err {jnp.max(jnp.abs(out1 - ref1))}"
    )

    # Case 2: batch not a multiple of the tile -> padding + multi-tile grid.
    y2 = jax.random.normal(k_y2, (20, num_in_features), jnp.float32)
    t2 = jnp.float32(-1.25)  # remainder(-1.25, 1) = 0.75, matches torch
    out2 = jax.block_until_ready(neural_ode_forward(t2, y2, params, btile=8))
    ref2 = neural_ode_reference(t2, y2, params)
    assert out2.shape == (20, num_out_features)
    assert jnp.allclose(out2, ref2, atol=1e-5, rtol=1e-5), (
        f"max abs err {jnp.max(jnp.abs(out2 - ref2))}"
    )

    print("KERNEL_OK")
</pallas_src>

<mosaic_0001>
module attributes {stable_mosaic.version = 11 : i64} {
  func.func @neural_ode_kernel(%arg0: i32, %arg1: memref<1x1xf32, #tpu.memory_space<smem>>, %arg2: memref<8x16xf32, #tpu.memory_space<vmem>>, %arg3: memref<1x80xf32, #tpu.memory_space<vmem>>, %arg4: memref<16x80xf32, #tpu.memory_space<vmem>>, %arg5: memref<1x80xf32, #tpu.memory_space<vmem>>, %arg6: memref<80x80xf32, #tpu.memory_space<vmem>>, %arg7: memref<1x80xf32, #tpu.memory_space<vmem>>, %arg8: memref<80x80xf32, #tpu.memory_space<vmem>>, %arg9: memref<1x80xf32, #tpu.memory_space<vmem>>, %arg10: memref<80x16xf32, #tpu.memory_space<vmem>>, %arg11: memref<1x16xf32, #tpu.memory_space<vmem>>, %arg12: memref<8x16xf32, #tpu.memory_space<vmem>>) attributes {dimension_semantics = [#tpu.dimension_semantics<parallel>], iteration_bounds = array<i64: 1>, scalar_prefetch = 0 : i64, scratch_operands = 0 : i64, tpu.core_type = #tpu.core_type<tc>, window_params = [{transform_indices = @transform_0, window_bounds = array<i64: 1, 1>}, {transform_indices = @transform_1, window_bounds = array<i64: 8, 16>}, {pipeline_mode = #tpu.pipeline_mode<synchronous>, transform_indices = @transform_2, window_bounds = array<i64: 1, 80>}, {pipeline_mode = #tpu.pipeline_mode<synchronous>, transform_indices = @transform_3, window_bounds = array<i64: 16, 80>}, {pipeline_mode = #tpu.pipeline_mode<synchronous>, transform_indices = @transform_4, window_bounds = array<i64: 1, 80>}, {pipeline_mode = #tpu.pipeline_mode<synchronous>, transform_indices = @transform_5, window_bounds = array<i64: 80, 80>}, {pipeline_mode = #tpu.pipeline_mode<synchronous>, transform_indices = @transform_6, window_bounds = array<i64: 1, 80>}, {pipeline_mode = #tpu.pipeline_mode<synchronous>, transform_indices = @transform_7, window_bounds = array<i64: 80, 80>}, {pipeline_mode = #tpu.pipeline_mode<synchronous>, transform_indices = @transform_8, window_bounds = array<i64: 1, 80>}, {pipeline_mode = #tpu.pipeline_mode<synchronous>, transform_indices = @transform_9, window_bounds = array<i64: 80, 16>}, {pipeline_mode = #tpu.pipeline_mode<synchronous>, transform_indices = @transform_10, window_bounds = array<i64: 1, 16>}, {transform_indices = @transform_11, window_bounds = array<i64: 8, 16>}]} {
    %c0 = arith.constant 0 : index
    %c0_0 = arith.constant 0 : index
    %0 = memref.load %arg1[%c0, %c0_0] : memref<1x1xf32, #tpu.memory_space<smem>>
    %c0_1 = arith.constant 0 : index
    %c0_2 = arith.constant 0 : index
    %1 = vector.load %arg2[%c0_1, %c0_2] : memref<8x16xf32, #tpu.memory_space<vmem>>, vector<8x16xf32>
    %c0_3 = arith.constant 0 : index
    %c0_4 = arith.constant 0 : index
    %2 = vector.load %arg3[%c0_3, %c0_4] : memref<1x80xf32, #tpu.memory_space<vmem>>, vector<1x80xf32>
    %3 = vector.broadcast %0 : f32 to vector<1x80xf32>
    %4 = arith.mulf %3, %2 : vector<1x80xf32>
    %c0_5 = arith.constant 0 : index
    %c0_6 = arith.constant 0 : index
    %5 = vector.load %arg4[%c0_5, %c0_6] : memref<16x80xf32, #tpu.memory_space<vmem>>, vector<16x80xf32>
    %cst = arith.constant dense<0.000000e+00> : vector<8x80xf32>
    %6 = tpu.matmul %1, %5, %cst {dimension_numbers = #tpu.dot_dimension_numbers<[1], [0], [0], [1], [0, 0, 1, 1], [], []>} : vector<8x16xf32>, vector<16x80xf32>, vector<8x80xf32> -> vector<8x80xf32>
    %7 = vector.broadcast %4 : vector<1x80xf32> to vector<8x80xf32>
    %8 = arith.addf %7, %6 : vector<8x80xf32>
    %c0_7 = arith.constant 0 : index
    %c0_8 = arith.constant 0 : index
    %9 = vector.load %arg5[%c0_7, %c0_8] : memref<1x80xf32, #tpu.memory_space<vmem>>, vector<1x80xf32>
    %10 = vector.broadcast %9 : vector<1x80xf32> to vector<8x80xf32>
    %11 = arith.addf %8, %10 : vector<8x80xf32>
    %cst_9 = arith.constant 5.000000e-01 : f32
    %12 = vector.broadcast %cst_9 : f32 to vector<8x80xf32>
    %13 = arith.mulf %12, %11 : vector<8x80xf32>
    %cst_10 = arith.constant 2.000000e+00 : f32
    %14 = math.sqrt %cst_10 : f32
    %cst_11 = arith.constant 1.000000e+00 : f32
    %15 = arith.divf %cst_11, %14 : f32
    %16 = vector.broadcast %15 : f32 to vector<8x80xf32>
    %17 = arith.mulf %11, %16 : vector<8x80xf32>
    %18 = math.erf %17 : vector<8x80xf32>
    %cst_12 = arith.constant 1.000000e+00 : f32
    %19 = vector.broadcast %cst_12 : f32 to vector<8x80xf32>
    %20 = arith.addf %19, %18 : vector<8x80xf32>
    %21 = arith.mulf %13, %20 : vector<8x80xf32>
    %c0_13 = arith.constant 0 : index
    %c0_14 = arith.constant 0 : index
    %22 = vector.load %arg6[%c0_13, %c0_14] : memref<80x80xf32, #tpu.memory_space<vmem>>, vector<80x80xf32>
    %cst_15 = arith.constant dense<0.000000e+00> : vector<8x80xf32>
    %23 = tpu.matmul %21, %22, %cst_15 {dimension_numbers = #tpu.dot_dimension_numbers<[1], [0], [0], [1], [0, 0, 1, 1], [], []>} : vector<8x80xf32>, vector<80x80xf32>, vector<8x80xf32> -> vector<8x80xf32>
    %c0_16 = arith.constant 0 : index
    %c0_17 = arith.constant 0 : index
    %24 = vector.load %arg7[%c0_16, %c0_17] : memref<1x80xf32, #tpu.memory_space<vmem>>, vector<1x80xf32>
    %25 = vector.broadcast %24 : vector<1x80xf32> to vector<8x80xf32>
    %26 = arith.addf %23, %25 : vector<8x80xf32>
    %cst_18 = arith.constant 5.000000e-01 : f32
    %27 = vector.broadcast %cst_18 : f32 to vector<8x80xf32>
    %28 = arith.mulf %27, %26 : vector<8x80xf32>
    %cst_19 = arith.constant 2.000000e+00 : f32
    %29 = math.sqrt %cst_19 : f32
    %cst_20 = arith.constant 1.000000e+00 : f32
    %30 = arith.divf %cst_20, %29 : f32
    %31 = vector.broadcast %30 : f32 to vector<8x80xf32>
    %32 = arith.mulf %26, %31 : vector<8x80xf32>
    %33 = math.erf %32 : vector<8x80xf32>
    %cst_21 = arith.constant 1.000000e+00 : f32
    %34 = vector.broadcast %cst_21 : f32 to vector<8x80xf32>
    %35 = arith.addf %34, %33 : vector<8x80xf32>
    %36 = arith.mulf %28, %35 : vector<8x80xf32>
    %c0_22 = arith.constant 0 : index
    %c0_23 = arith.constant 0 : index
    %37 = vector.load %arg8[%c0_22, %c0_23] : memref<80x80xf32, #tpu.memory_space<vmem>>, vector<80x80xf32>
    %cst_24 = arith.constant dense<0.000000e+00> : vector<8x80xf32>
    %38 = tpu.matmul %36, %37, %cst_24 {dimension_numbers = #tpu.dot_dimension_numbers<[1], [0], [0], [1], [0, 0, 1, 1], [], []>} : vector<8x80xf32>, vector<80x80xf32>, vector<8x80xf32> -> vector<8x80xf32>
    %c0_25 = arith.constant 0 : index
    %c0_26 = arith.constant 0 : index
    %39 = vector.load %arg9[%c0_25, %c0_26] : memref<1x80xf32, #tpu.memory_space<vmem>>, vector<1x80xf32>
    %40 = vector.broadcast %39 : vector<1x80xf32> to vector<8x80xf32>
    %41 = arith.addf %38, %40 : vector<8x80xf32>
    %cst_27 = arith.constant 5.000000e-01 : f32
    %42 = vector.broadcast %cst_27 : f32 to vector<8x80xf32>
    %43 = arith.mulf %42, %41 : vector<8x80xf32>
    %cst_28 = arith.constant 2.000000e+00 : f32
    %44 = math.sqrt %cst_28 : f32
    %cst_29 = arith.constant 1.000000e+00 : f32
    %45 = arith.divf %cst_29, %44 : f32
    %46 = vector.broadcast %45 : f32 to vector<8x80xf32>
    %47 = arith.mulf %41, %46 : vector<8x80xf32>
    %48 = math.erf %47 : vector<8x80xf32>
    %cst_30 = arith.constant 1.000000e+00 : f32
    %49 = vector.broadcast %cst_30 : f32 to vector<8x80xf32>
    %50 = arith.addf %49, %48 : vector<8x80xf32>
    %51 = arith.mulf %43, %50 : vector<8x80xf32>
    %c0_31 = arith.constant 0 : index
    %c0_32 = arith.constant 0 : index
    %52 = vector.load %arg10[%c0_31, %c0_32] : memref<80x16xf32, #tpu.memory_space<vmem>>, vector<80x16xf32>
    %cst_33 = arith.constant dense<0.000000e+00> : vector<8x16xf32>
    %53 = tpu.matmul %51, %52, %cst_33 {dimension_numbers = #tpu.dot_dimension_numbers<[1], [0], [0], [1], [0, 0, 1, 1], [], []>} : vector<8x80xf32>, vector<80x16xf32>, vector<8x16xf32> -> vector<8x16xf32>
    %c0_34 = arith.constant 0 : index
    %c0_35 = arith.constant 0 : index
    %54 = vector.load %arg11[%c0_34, %c0_35] : memref<1x16xf32, #tpu.memory_space<vmem>>, vector<1x16xf32>
    %55 = vector.broadcast %54 : vector<1x16xf32> to vector<8x16xf32>
    %56 = arith.addf %53, %55 : vector<8x16xf32>
    %c0_36 = arith.constant 0 : index
    %c0_37 = arith.constant 0 : index
    %57 = vector.load %arg12[%c0_36, %c0_37] : memref<8x16xf32, #tpu.memory_space<vmem>>, vector<8x16xf32>
    tpu.vector_store %arg12[%c0_36, %c0_37], %56 {strides = array<i32>} : memref<8x16xf32, #tpu.memory_space<vmem>>, vector<8x16xf32>,
    return
  }
  func.func @transform_0(%arg0: i32) -> (i32, i32) {
    %c0_i32 = arith.constant 0 : i32
    %c0_i32_0 = arith.constant 0 : i32
    %c0_i32_1 = arith.constant 0 : i32
    return %c0_i32, %c0_i32_0 : i32, i32
  }
  func.func @transform_1(%arg0: i32) -> (i32, i32) {
    %c0_i32 = arith.constant 0 : i32
    %c0_i32_0 = arith.constant 0 : i32
    return %arg0, %c0_i32 : i32, i32
  }
  func.func @transform_2(%arg0: i32) -> (i32, i32) {
    %c0_i32 = arith.constant 0 : i32
    %c0_i32_0 = arith.constant 0 : i32
    %c0_i32_1 = arith.constant 0 : i32
    return %c0_i32, %c0_i32_0 : i32, i32
  }
  func.func @transform_3(%arg0: i32) -> (i32, i32) {
    %c0_i32 = arith.constant 0 : i32
    %c0_i32_0 = arith.constant 0 : i32
    %c0_i32_1 = arith.constant 0 : i32
    return %c0_i32, %c0_i32_0 : i32, i32
  }
  func.func @transform_4(%arg0: i32) -> (i32, i32) {
    %c0_i32 = arith.constant 0 : i32
    %c0_i32_0 = arith.constant 0 : i32
    %c0_i32_1 = arith.constant 0 : i32
    return %c0_i32, %c0_i32_0 : i32, i32
  }
  func.func @transform_5(%arg0: i32) -> (i32, i32) {
    %c0_i32 = arith.constant 0 : i32
    %c0_i32_0 = arith.constant 0 : i32
    %c0_i32_1 = arith.constant 0 : i32
    return %c0_i32, %c0_i32_0 : i32, i32
  }
  func.func @transform_6(%arg0: i32) -> (i32, i32) {
    %c0_i32 = arith.constant 0 : i32
    %c0_i32_0 = arith.constant 0 : i32
    %c0_i32_1 = arith.constant 0 : i32
    return %c0_i32, %c0_i32_0 : i32, i32
  }
  func.func @transform_7(%arg0: i32) -> (i32, i32) {
    %c0_i32 = arith.constant 0 : i32
    %c0_i32_0 = arith.constant 0 : i32
    %c0_i32_1 = arith.constant 0 : i32
    return %c0_i32, %c0_i32_0 : i32, i32
  }
  func.func @transform_8(%arg0: i32) -> (i32, i32) {
    %c0_i32 = arith.constant 0 : i32
    %c0_i32_0 = arith.constant 0 : i32
    %c0_i32_1 = arith.constant 0 : i32
    return %c0_i32, %c0_i32_0 : i32, i32
  }
  func.func @transform_9(%arg0: i32) -> (i32, i32) {
    %c0_i32 = arith.constant 0 : i32
    %c0_i32_0 = arith.constant 0 : i32
    %c0_i32_1 = arith.constant 0 : i32
    return %c0_i32, %c0_i32_0 : i32, i32
  }
  func.func @transform_10(%arg0: i32) -> (i32, i32) {
    %c0_i32 = arith.constant 0 : i32
    %c0_i32_0 = arith.constant 0 : i32
    %c0_i32_1 = arith.constant 0 : i32
    return %c0_i32, %c0_i32_0 : i32, i32
  }
  func.func @transform_11(%arg0: i32) -> (i32, i32) {
    %c0_i32 = arith.constant 0 : i32
    %c0_i32_0 = arith.constant 0 : i32
    return %arg0, %c0_i32 : i32, i32
  }
}

</mosaic_0001>

<bundles_post_ra>
// kernel: neural_ode_forward.1
= control target key start
LH: loop header
LB: loop body
LE: loop exit
PB: predicated region body
PF: predicated region fallthrough
CT: control target
= control target key end

     0   :  { %17 = vsyncpa [#allocation4], 0  ;;  %s832_s0 = inlined_call_operand.<no memory space> [shape: f32[1,1], index: 0, kind: input, shape index: {}]   ;;  %s833_s1 = inlined_call_operand.vmem [shape: f32[8,16], index: 1, kind: input, shape index: {}]   ;;  %s834_s2 = inlined_call_operand.vmem [shape: f32[1,80], index: 2, kind: input, shape index: {}]   ;;  %s835_s3 = inlined_call_operand.vmem [shape: f32[16,80], index: 3, kind: input, shape index: {}]   ;;  %s836_s4 = inlined_call_operand.vmem [shape: f32[1,80], index: 4, kind: input, shape index: {}]   ;;  %s837_s5 = inlined_call_operand.vmem [shape: f32[80,80], index: 5, kind: input, shape index: {}]   ;;  %s838_s6 = inlined_call_operand.vmem [shape: f32[1,80], index: 6, kind: input, shape index: {}]   ;;  %s839_s7 = inlined_call_operand.hbm [shape: f32[80,80], index: 7, kind: input, shape index: {}]   ;;  %s840_s8 = inlined_call_operand.vmem [shape: f32[1,80], index: 8, kind: input, shape index: {}]   ;;  %s841_s9 = inlined_call_operand.vmem [shape: f32[80,16], index: 9, kind: input, shape index: {}]   ;;  %s842_s10 = inlined_call_operand.vmem [shape: f32[1,16], index: 10, kind: input, shape index: {}]   ;;  %s843_s11 = inlined_call_operand.hbm [shape: f32[8,16], index: 11, kind: output, shape index: {}]  }
   0x1   :  { %18 = vsyncpa [#allocation5], 0  ;;  %s628_s17 = smov [#allocation3]  }
   0x2   :  { %s38_s18 = sshll.u32 %s628_s17, 4  ;;  %s39_s18 = int_to_ptr.vmem [resolvable:$true] %s38_s18 }
   0x3   :  { %s592_s19 = scalar_lea.vmem %s39_s18, 1280  ;;  %p597_p1 = scmp.lt.s32.totalorder %s39_s18, %s39_s18 }
   0x4   :  { %p593_p0 = scmp.ne.s32.totalorder %s39_s18, %s592_s19  ;;  %p598_p2 = scmp.lt.s32.totalorder %s592_s19, %s592_s19 }
   0x6   :  { %p599_p3 = por %p598_p2, %p597_p1 }
   0x8   :  { %p600_p4 = pnand %p599_p3, %p593_p0 }
   0xa   :  { %603 = shalt.err (!%p600_p4)
}
   0xb   :  { %s629_s20 = smov 128   ;;  %s630_s21 = smov 8  }
   0xc   :  { %44 = dma.hbm_to_vmem [thread:$0]  %s839_s7, 1280, %s39_s18, [#allocation4], %s629_s20, %s629_s20, %s630_s21  }
   0xd   :  { %624 = dma.done.wait [#allocation4], 1280  }
   0xe   :  { %625 = vsyncadd [#allocation4], 4294966016  ;;  %v631_v0 = vmov 0.0   ;;  %vm632_vm0 = vmmov 0   ;;  %v60_v1 = vld [vmem:[%s835_s3 + $0x8] sm:$0xff]  ;;  %v59_v2 = vld [vmem:[%s835_s3] sm:$0xff]  ;;  %v136_v14 = vlaneseq  ;;  %v57_v17 = vstv %s832_s0 }
   0xf   :  { %496 = vmatprep.subr.mxu0 %v631_v0  ;;  %500 = vmatprep.mubr.msk.f32.mxu0 %vm632_vm0, %v631_v0  ;;  %v55_v3 = vld [vmem:[%s833_s1] sm:$0xff]  ;;  %vm61_vm1 = vcmask 130048   ;;  %v164_v4 = vld [vmem:[%s837_s5 + $0x48] sm:$0xff]  ;;  %v162_v6 = vld [vmem:[%s837_s5 + $0x38] sm:$0xff]  ;;  %vm172_vm2 = vcmask 654336  }
  0x10   :  { %503 = vmatprep.subr.mxu1 %v631_v0  ;;  %523 = vmatprep.mubr.msk.f32.mxu1 %vm632_vm0, %v631_v0  ;;  %v163_v5 = vld [vmem:[%s837_s5 + $0x40] sm:$0xff]  ;;  %v161_v7 = vld [vmem:[%s837_s5 + $0x30] sm:$0xff]  ;;  %v160_v8 = vld [vmem:[%s837_s5 + $0x28] sm:$0xff]  ;;  %v137_v15 = vshrl.u32 %v136_v14, 7 }
  0x11   :  { %497 = vmatpush3.msra.mxu0 %v60_v1  ;;  %504 = vmatpush3.msra.mxu1 %v164_v4  ;;  %v159_v9 = vld [vmem:[%s837_s5 + $0x20] sm:$0xff]  ;;  %v158_v10 = vld [vmem:[%s837_s5 + $0x18] sm:$0xff]  ;;  %v157_v11 = vld [vmem:[%s837_s5 + $0x10] sm:$0xff] }
  0x12   :  { %498 = vmatprep.subr.mxu0 %v631_v0  ;;  %505 = vmatprep.subr.mxu1 %v631_v0  ;;  %v156_v12 = vld [vmem:[%s837_s5 + $0x8] sm:$0xff]  ;;  %v155_v13 = vld [vmem:[%s837_s5] sm:$0xff]  ;;  %v138_v19 = vsub.s32 0, %v137_v15  ;;  %v258_v33 = vld [vmem:[#allocation3 + $0x38] sm:$0xff] }
  0x13   :  { %499 = vmatpush3.msra.mxu0 %v59_v2  ;;  %506 = vmatpush3.msra.mxu1 %v163_v5  ;;  %v56_v16 = vld [vmem:[%s834_s2] sm:$0x1]  ;;  %v260_v31 = vld [vmem:[#allocation3 + $0x48] sm:$0xff]  ;;  %v257_v34 = vld [vmem:[#allocation3 + $0x30] sm:$0xff] }
  0x14   :  { %501 = vmatmul.mubr.msk.f32.vlgmr.msra.gmra.mxu0 %vm61_vm1, %v55_v3  ;;  %526 = vmatprep.subr.mxu0 %v631_v0  ;;  %v58_v18 = vmul.f32 %v57_v17, %v56_v16  ;;  %v453_v22 = vld [vmem:[%s836_s4] ss:$0 sm:$0xff]  ;;  %v256_v35 = vld [vmem:[#allocation3 + $0x28] sm:$0xff]  ;;  %v254_v37 = vld [vmem:[#allocation3 + $0x18] sm:$0xff] }
  0x15   :  { %546 = vmatprep.mubr.msk.f32.mxu0 %vm632_vm0, %v631_v0  ;;  %507 = vmatprep.subr.mxu1 %v631_v0  ;;  %v259_v32 = vld [vmem:[#allocation3 + $0x40] sm:$0xff]  ;;  %v253_v38 = vld [vmem:[#allocation3 + $0x10] sm:$0xff]  ;;  %v252_v39 = vld [vmem:[#allocation3 + $0x8] sm:$0xff] }
  0x16   :  { %508 = vmatpush3.msra.mxu1 %v162_v6  ;;  %v139_v20 = vrot.slane %v58_v18, %v138_v19  ;;  %527 = vmatpush3.msra.mxu0 %v260_v31  ;;  %v255_v36 = vld [vmem:[#allocation3 + $0x20] sm:$0xff]  ;;  %v355_v50 = vld [vmem:[%s841_s9 + $0x48] sm:$0xff]  ;;  %v353_v52 = vld [vmem:[%s841_s9 + $0x38] sm:$0xff] }
  0x17   :  { %509 = vmatprep.subr.mxu1 %v631_v0  ;;  %528 = vmatprep.subr.mxu0 %v631_v0  ;;  %v251_v40 = vld [vmem:[#allocation3] sm:$0xff]  ;;  %v352_v53 = vld [vmem:[%s841_s9 + $0x30] sm:$0xff]  ;;  %v351_v54 = vld [vmem:[%s841_s9 + $0x28] sm:$0xff] }
  0x18   :  { %510 = vmatpush3.msra.mxu1 %v161_v7  ;;  %529 = vmatpush3.msra.mxu0 %v259_v32  ;;  %v454_v41 = vld [vmem:[%s838_s6] ss:$0 sm:$0xff]  ;;  %v349_v56 = vld [vmem:[%s841_s9 + $0x18] sm:$0xff]  ;;  %v348_v57 = vld [vmem:[%s841_s9 + $0x10] sm:$0xff] }
  0x19   :  { %511 = vmatprep.subr.mxu1 %v631_v0  ;;  %530 = vmatprep.subr.mxu0 %v631_v0  ;;  %v354_v51 = vld [vmem:[%s841_s9 + $0x40] sm:$0xff]  ;;  %v347_v58 = vld [vmem:[%s841_s9 + $0x8] sm:$0xff] }
  0x1a   :  { %512 = vmatpush3.msra.mxu1 %v160_v8  ;;  %531 = vmatpush3.msra.mxu0 %v258_v33  ;;  %v350_v55 = vld [vmem:[%s841_s9 + $0x20] sm:$0xff] }
  0x1b   :  { %513 = vmatprep.subr.mxu1 %v631_v0  ;;  %532 = vmatprep.subr.mxu0 %v631_v0  ;;  %v346_v59 = vld [vmem:[%s841_s9] sm:$0xff]  ;;  %s633_s9 = smov [#allocation6]  }
  0x1c   :  { %514 = vmatpush3.msra.mxu1 %v159_v9  ;;  %533 = vmatpush3.msra.mxu0 %v257_v34  ;;  %v456_v60 = vld [vmem:[%s840_s8] ss:$0 sm:$0xff]  ;;  %s443_s1 = sshll.u32 %s633_s9, 4  ;;  %s444_s1 = int_to_ptr.vmem [resolvable:$true] %s443_s1 }
  0x1d   :  { %515 = vmatprep.subr.mxu1 %v631_v0  ;;  %534 = vmatprep.subr.mxu0 %v631_v0  ;;  %s604_s8 = scalar_lea.vmem %s444_s1, 128  ;;  %p609_p6 = scmp.lt.s32.totalorder %s444_s1, %s444_s1 }
  0x1e   :  { %516 = vmatpush3.msra.mxu1 %v158_v10  ;;  %535 = vmatpush3.msra.mxu0 %v256_v35  ;;  %p605_p5 = scmp.ne.s32.totalorder %s444_s1, %s604_s8  ;;  %p610_p7 = scmp.lt.s32.totalorder %s604_s8, %s604_s8 }
  0x1f   :  { %517 = vmatprep.subr.mxu1 %v631_v0  ;;  %536 = vmatprep.subr.mxu0 %v631_v0 }
  0x20   :  { %518 = vmatpush3.msra.mxu1 %v157_v11  ;;  %537 = vmatpush3.msra.mxu0 %v255_v36  ;;  %p611_p8 = por %p610_p7, %p609_p6 }
  0x21   :  { %519 = vmatprep.subr.mxu1 %v631_v0  ;;  %538 = vmatprep.subr.mxu0 %v631_v0 }
  0x22   :  { %520 = vmatpush3.msra.mxu1 %v156_v12  ;;  %539 = vmatpush3.msra.mxu0 %v254_v37  ;;  %p612_p9 = pnand %p611_p8, %p605_p5 }
  0x23   :  { %521 = vmatprep.subr.mxu1 %v631_v0  ;;  %540 = vmatprep.subr.mxu0 %v631_v0 }
  0x24   :  { %522 = vmatpush3.msra.mxu1 %v155_v13  ;;  %541 = vmatpush3.msra.mxu0 %v253_v38 }
  0x25   :  { %549 = vmatprep.subr.mxu1 %v631_v0  ;;  %542 = vmatprep.subr.mxu0 %v631_v0 }
  0x26   :  { %543 = vmatpush3.msra.mxu0 %v252_v39 }
  0x27   :  { %544 = vmatprep.subr.mxu0 %v631_v0 }
  0x28   :  { %545 = vmatpush3.msra.mxu0 %v251_v40 }
  0xd4   :  { %v131_v21 = vpop.f32.mrf.mxu0 }
  0xd5   :  { %v141_v23 = vadd.f32 %v139_v20, %v131_v21 }
  0xd6   :  { %v502_v24 = vpop.f32.mrf.mxu0 }
  0xd7   :  { %v149_v25 = vadd.f32 %v453_v22, %v141_v23 }
  0xd9   :  { %v151_v26 = vmul.f32 0.70710677, %v149_v25  ;;  %v150_v28 = vmul.f32 0.5, %v149_v25 }
  0xdb   :  { %578 = verf.f32 %v151_v26 }
  0xe8   :  { %v579_v27 = vpop.eup %578 }
  0xe9   :  { %v153_v29 = vadd.f32 1.0, %v579_v27 }
  0xeb   :  { %v154_v30 = vmul.f32 %v153_v29, %v150_v28 }
  0xed   :  { %524 = vmatmul.mubr.msk.f32.vlgmr.msra.gmra.mxu1 %vm172_vm2, %v154_v30 }
  0xee   :  { %569 = vmatprep.mubr.msk.f32.mxu1 %vm632_vm0, %v631_v0  ;;  %550 = vmatpush3.msra.mxu1 %v355_v50 }
  0xef   :  { %551 = vmatprep.subr.mxu1 %v631_v0 }
  0xf0   :  { %552 = vmatpush3.msra.mxu1 %v354_v51 }
  0xf1   :  { %553 = vmatprep.subr.mxu1 %v631_v0 }
  0xf2   :  { %554 = vmatpush3.msra.mxu1 %v353_v52 }
  0xf3   :  { %555 = vmatprep.subr.mxu1 %v631_v0 }
  0xf4   :  { %556 = vmatpush3.msra.mxu1 %v352_v53 }
  0xf5   :  { %557 = vmatprep.subr.mxu1 %v631_v0 }
  0xf6   :  { %558 = vmatpush3.msra.mxu1 %v351_v54 }
  0xf7   :  { %559 = vmatprep.subr.mxu1 %v631_v0 }
  0xf8   :  { %560 = vmatpush3.msra.mxu1 %v350_v55 }
  0xf9   :  { %561 = vmatprep.subr.mxu1 %v631_v0 }
  0xfa   :  { %562 = vmatpush3.msra.mxu1 %v349_v56 }
  0xfb   :  { %563 = vmatprep.subr.mxu1 %v631_v0 }
  0xfc   :  { %564 = vmatpush3.msra.mxu1 %v348_v57 }
  0xfd   :  { %565 = vmatprep.subr.mxu1 %v631_v0 }
  0xfe   :  { %566 = vmatpush3.msra.mxu1 %v347_v58 }
  0xff   :  { %567 = vmatprep.subr.mxu1 %v631_v0  ;;  %v458_v0 = vld [vmem:[%s842_s10] ss:$0 sm:$0xff] }
 0x100   :  { %568 = vmatpush3.msra.mxu1 %v346_v59 }
 0x1ad   :  { %v242_v42 = vpop.f32.mrf.mxu1 }
 0x1ae   :  { %v243_v43 = vadd.f32 %v454_v41, %v242_v42 }
 0x1af   :  { %v525_v44 = vpop.f32.mrf.mxu1 }
 0x1b0   :  { %v247_v45 = vmul.f32 0.70710677, %v243_v43  ;;  %v246_v47 = vmul.f32 0.5, %v243_v43 }
 0x1b2   :  { %580 = verf.f32 %v247_v45 }
 0x1bf   :  { %v581_v46 = vpop.eup %580 }
 0x1c0   :  { %v249_v48 = vadd.f32 1.0, %v581_v46 }
 0x1c2   :  { %v250_v49 = vmul.f32 %v249_v48, %v246_v47 }
 0x1c4   :  { %547 = vmatmul.mubr.msk.f32.vlgmr.msra.gmra.mxu0 %vm172_vm2, %v250_v49 }
 0x284   :  { %v337_v61 = vpop.f32.mrf.mxu0 }
 0x285   :  { %v338_v62 = vadd.f32 %v456_v60, %v337_v61 }
 0x286   :  { %v548_v63 = vpop.f32.mrf.mxu0 }
 0x287   :  { %v342_v1 = vmul.f32 0.70710677, %v338_v62  ;;  %v341_v3 = vmul.f32 0.5, %v338_v62 }
 0x289   :  { %582 = verf.f32 %v342_v1 }
 0x296   :  { %v583_v2 = vpop.eup %582 }
 0x297   :  { %v344_v4 = vadd.f32 1.0, %v583_v2 }
 0x299   :  { %v345_v5 = vmul.f32 %v344_v4, %v341_v3 }
 0x29b   :  { %570 = vmatmul.mubr.msk.f32.vlgmr.msra.gmra.mxu1 %vm172_vm2, %v345_v5 }
 0x35b   :  { %v432_v6 = vpop.f32.mrf.mxu1 }
 0x35c   :  { %v433_v7 = vadd.f32 %v458_v0, %v432_v6 }
 0x35d   :  { %v571_v8 = vpop.f32.mrf.mxu1 }
 0x35e   :  { %436 = vst.msk [vmem:[#allocation6] sm:$0xff] %vm61_vm1, %v433_v7 }
 0x35f   :  { %615 = shalt.err (!%p612_p9)
}
 0x360   :  { %446 = dma.vmem_to_hbm [thread:$0]  %s444_s1, 128, %s843_s11, [#allocation5]  }
 0x361   :  { %626 = dma.done.wait [#allocation5], 128  }
 0x362   :  { %627 = vsyncadd [#allocation5], 4294967168 }
 0x363   :  { %450 = vsyncpa [#allocation4], 1 }
 0x364   :  { %451 = vsyncpa [#allocation5], 1 }

</bundles_post_ra>
